<compile_context>
chip_gen: v6e
topology: v6e:2x2x1
jax: 0.10.0
libtpu: 0.0.40
codegen_flags: <defaults>
</compile_context>

<pallas_src>
import jax
import jax.numpy as jnp
import numpy as np
from jax.experimental import pallas as pl
from jax.experimental.pallas import tpu as pltpu


def _make_fp_kernel(n_layers, use_points1, num_m, mlp_dtype):
    """Builds the fused per-(batch, N-tile) kernel."""

    def kernel(*refs):
        xyz1_ref, xyz2_ref, p2_ref = refs[0], refs[1], refs[2]
        i = 3
        p1_ref = None
        if use_points1:
            p1_ref = refs[i]
            i += 1
        param_refs = refs[i:-1]
        out_ref = refs[-1]

        a = xyz1_ref[0]      # (3, TN)   query coords, N in lanes
        bt = xyz2_ref[0]     # (M, 3)    reference coords, M in sublanes
        tn = a.shape[1]

        # Squared pairwise distances in transposed layout d2[m, n], built with
        # three rank-1 VPU updates (no MXU, no padded K=3 matmul).
        d2 = jnp.zeros((num_m, tn), jnp.float32)
        for k in range(3):
            diff = bt[:, k:k + 1] - a[k:k + 1, :]          # (M,1)-(1,TN) -> (M,TN)
            d2 = d2 + diff * diff

        m_iota = jax.lax.broadcasted_iota(jnp.int32, (num_m, tn), 0)

        # three_nn (earliest index wins on ties, like the CUDA scan-order
        # kernel), fused with construction of the un-normalized interpolation
        # matrix wmat^T and its per-query normalizer.
        d_work = d2
        wmat = jnp.zeros((num_m, tn), jnp.float32)
        norm = jnp.zeros((1, tn), jnp.float32)
        for k in range(3):
            dmin = jnp.min(d_work, axis=0, keepdims=True)                     # (1, TN)
            amin = jnp.min(jnp.where(d_work == dmin, m_iota, num_m),
                           axis=0, keepdims=True)                             # (1, TN)
            mask = m_iota == amin                                             # (M, TN)
            recip = 1.0 / jnp.maximum(jnp.sqrt(dmin), 1e-10)                  # (1, TN)
            wmat = wmat + jnp.where(mask, recip, 0.0)
            norm = norm + recip
            if k < 2:
                d_work = jnp.where(mask, jnp.inf, d_work)

        # three_interpolate: interp^T = points2 (C2, M) @ wmat^T (M, TN),
        # then normalize per query point (per lane).
        interp = jnp.dot(p2_ref[0], wmat, preferred_element_type=jnp.float32)  # (C2, TN)
        interp = interp * (1.0 / norm)

        # MLP of 1x1 convs (BN folded), channels-first.  Layer 0 handles the
        # implicit concat [interp, points1] by splitting its weight.
        pi = 0
        w0a = param_refs[pi][...]; pi += 1            # (Co0, C2)
        if use_points1:
            w0b = param_refs[pi][...]; pi += 1        # (Co0, C1)
        b0 = param_refs[pi][...]; pi += 1             # (Co0, 1)

        h = jnp.dot(w0a, interp.astype(mlp_dtype),
                    preferred_element_type=jnp.float32)
        if use_points1:
            h = h + jnp.dot(w0b, p1_ref[0].astype(mlp_dtype),
                            preferred_element_type=jnp.float32)
        h = h + b0
        if n_layers > 1:
            h = jnp.maximum(h, 0.0)

        for l in range(1, n_layers):
            w = param_refs[pi][...]; pi += 1          # (Cout, Cin)
            bvec = param_refs[pi][...]; pi += 1       # (Cout, 1)
            h = jnp.dot(w, h.astype(mlp_dtype),
                        preferred_element_type=jnp.float32) + bvec
            if l < n_layers - 1:
                h = jnp.maximum(h, 0.0)

        out_ref[0] = h.astype(out_ref.dtype)          # lane-dense (Co, TN) store

    return kernel


def _pick_tile_n(N, M):
    """N-tile: whole N when small, else a 128-aligned tile capped so the
    ~6 live (M, TN) f32 temporaries of the nearest-neighbor search stay under
    ~24 MiB (comfortable even on v7x's 64 MiB per-TC VMEM)."""
    cap = (24 * 1024 * 1024) // (6 * 4 * max(M, 1))
    cap = max(128, (cap // 128) * 128)
    if N <= cap and N <= 1024:
        return N
    return min(1024, cap, max(128, (N // 128) * 128))


def pointnet_fp_module2(xyz1, xyz2, points1, points2, ws, bs,
                        use_points1=True, mlp_dtype=jnp.float32, tile_n=None):
    """Forward pass matching PointNet_FP_Module2.forward.

    Args (PyTorch NCHW-style layouts, all kept channels-first; no activation
    transposes are performed on the host):
      xyz1:    (B, 3, N)   float32
      xyz2:    (B, 3, M)   float32
      points1: (B, C1, N)  float32 (used iff use_points1)
      points2: (B, C2, M)  float32
      ws, bs:  folded per-layer weights (C_in, C_out) and biases (1, C_out)
      mlp_dtype: dtype of the MLP matmul operands (bf16 gives 2-3x MXU
                 throughput on v6e/v7x; f32 keeps bitwise-tight accuracy).
    Returns:
      (B, mlp[-1], N) float32
    """
    B, _, N = xyz1.shape
    M = xyz2.shape[2]
    if M < 3:
        raise ValueError("three_nn requires at least 3 reference points (M >= 3)")
    c2 = points2.shape[1]
    c1 = points1.shape[1] if use_points1 else 0
    c_out = ws[-1].shape[1]
    n_layers = len(ws)

    TN = int(tile_n) if tile_n is not None else _pick_tile_n(N, M)

    # Only host transpose: the tiny xyz2 (B, 3, M) -> (B, M, 3) so reference
    # coords sit in sublanes without any in-kernel transpose.
    xyz2_t = jnp.transpose(xyz2, (0, 2, 1)).astype(jnp.float32)

    inputs = [xyz1.astype(jnp.float32), xyz2_t, points2.astype(jnp.float32)]
    in_specs = [
        pl.BlockSpec((1, 3, TN), lambda bb, tt: (bb, 0, tt)),
        pl.BlockSpec((1, M, 3), lambda bb, tt: (bb, 0, 0)),
        pl.BlockSpec((1, c2, M), lambda bb, tt: (bb, 0, 0)),
    ]
    if use_points1:
        inputs.append(points1.astype(jnp.float32))
        in_specs.append(pl.BlockSpec((1, c1, TN), lambda bb, tt: (bb, 0, tt)))

    # Parameters, transposed to (C_out, C_in) for the channels-first MLP.
    # Layer-0 weight split so the kernel never concatenates channels.
    param_arrays = []
    if use_points1:
        param_arrays += [jnp.transpose(ws[0][:c2, :]).astype(mlp_dtype),
                         jnp.transpose(ws[0][c2:, :]).astype(mlp_dtype),
                         jnp.transpose(bs[0]).astype(jnp.float32)]
    else:
        param_arrays += [jnp.transpose(ws[0]).astype(mlp_dtype),
                         jnp.transpose(bs[0]).astype(jnp.float32)]
    for w, bvec in zip(ws[1:], bs[1:]):
        param_arrays += [jnp.transpose(w).astype(mlp_dtype),
                         jnp.transpose(bvec).astype(jnp.float32)]

    for arr in param_arrays:
        inputs.append(arr)
        in_specs.append(pl.BlockSpec(arr.shape, lambda bb, tt: (0, 0)))

    # Explicit VMEM budget sized from the chosen tiles (+30% headroom),
    # clamped to 64 MiB so it stays safe on v7x.
    param_bytes = int(sum(int(np.prod(a.shape)) * np.dtype(a.dtype).itemsize
                          for a in param_arrays))
    max_c = max([c2, max(1, c1)] + [w.shape[1] for w in ws])
    est = 4 * (2 * (3 * TN + c1 * TN + c_out * TN)   # double-buffered tiled blocks
               + 2 * (3 * M + c2 * M)                # double-buffered per-batch blocks
               + 8 * M * TN                          # (M, TN) temporaries in the body
               + 4 * max_c * TN)                     # interp / MLP activations
    est += 2 * param_bytes
    vmem_limit = int(min(max(est * 1.3, 16 * 1024 * 1024), 64 * 1024 * 1024))

    out = pl.pallas_call(
        _make_fp_kernel(n_layers, use_points1, M, mlp_dtype),
        grid=(B, pl.cdiv(N, TN)),
        in_specs=in_specs,
        out_specs=pl.BlockSpec((1, c_out, TN), lambda bb, tt: (bb, 0, tt)),
        out_shape=jax.ShapeDtypeStruct((B, c_out, N), jnp.float32),
        compiler_params=pltpu.CompilerParams(
            dimension_semantics=("parallel", "parallel"),
            vmem_limit_bytes=vmem_limit),
    )(*inputs)
    return out  # already (B, C_out, N); no output transpose needed


def init_fp_params(key, in_channel, mlp, use_points1, in_channel_points1, if_bn=True):
    """Deterministic parameter init; BN (eval mode) folded into conv weight/bias."""
    eps = 1e-5
    if use_points1:
        in_channel = in_channel + in_channel_points1
    last = in_channel
    ws, bs = [], []
    for i, out_c in enumerate(mlp):
        key, k1, k2, k3, k4, k5, k6 = jax.random.split(key, 7)
        bound = 1.0 / float(np.sqrt(last))
        w = jax.random.uniform(k1, (last, out_c), jnp.float32, -bound, bound)
        bvec = jax.random.uniform(k2, (1, out_c), jnp.float32, -bound, bound)
        is_last = i == len(mlp) - 1
        if if_bn and not is_last:
            gamma = jax.random.uniform(k3, (out_c,), jnp.float32, 0.5, 1.5)
            beta = 0.1 * jax.random.normal(k4, (out_c,), jnp.float32)
            rmean = 0.1 * jax.random.normal(k5, (out_c,), jnp.float32)
            rvar = jax.random.uniform(k6, (out_c,), jnp.float32, 0.5, 1.5)
            scale = gamma / jnp.sqrt(rvar + eps)
            shift = beta - rmean * scale
            w = w * scale[None, :]
            bvec = bvec * scale[None, :] + shift[None, :]
        ws.append(w)
        bs.append(bvec)
        last = out_c
    return ws, bs


def ref_forward(xyz1, xyz2, points1, points2, ws, bs, use_points1):
    """Pure-JAX reference with identical math (for validation)."""
    B, _, N = xyz1.shape
    M = xyz2.shape[2]
    # d2[b, m, n] = sum_k (xyz2[b,k,m] - xyz1[b,k,n])^2
    diff = xyz2[:, :, :, None] - xyz1[:, :, None, :]            # (B, 3, M, N)
    d2 = jnp.sum(diff * diff, axis=1)                           # (B, M, N)

    m_iota = jax.lax.broadcasted_iota(jnp.int32, (B, M, N), 1)
    d_work = d2
    d_sel, i_sel = [], []
    for _ in range(3):
        dmin = jnp.min(d_work, axis=1, keepdims=True)
        amin = jnp.argmin(d_work, axis=1)[:, None, :]           # earliest on ties
        d_sel.append(dmin)
        i_sel.append(amin)
        d_work = jnp.where(m_iota == amin, jnp.inf, d_work)

    dist = jnp.maximum(jnp.sqrt(jnp.concatenate(d_sel, axis=1)), 1e-10)  # (B, 3, N)
    recip = 1.0 / dist
    norm = jnp.sum(recip, axis=1, keepdims=True)
    weight = recip / norm                                        # (B, 3, N)
    idx = jnp.concatenate(i_sel, axis=1)                         # (B, 3, N)

    onehot = (idx[..., None] == jnp.arange(M)).astype(jnp.float32)   # (B, 3, N, M)
    gathered = jnp.einsum("bcm,bknm->bckn", points2, onehot)         # (B, C2, 3, N)
    interp = jnp.sum(gathered * weight[:, None, :, :], axis=2)       # (B, C2, N)

    feat = jnp.concatenate([interp, points1], axis=1) if use_points1 else interp
    h = feat
    for i, (w, bvec) in enumerate(zip(ws, bs)):
        h = jnp.einsum("cd,bcn->bdn", w, h) + jnp.transpose(bvec)[None, :, :]
        if i < len(ws) - 1:
            h = jnp.maximum(h, 0.0)
    return h  # (B, C_out, N)


if __name__ == "__main__":
    key = jax.random.PRNGKey(0)
    B, N, M = 2, 64, 16
    in_channel = 8            # channels of points2
    in_channel_points1 = 4    # channels of points1
    mlp = [32, 32, 16]
    use_points1 = True

    key, kx1, kx2, kp1, kp2, kparam = jax.random.split(key, 6)
    xyz1 = jax.random.normal(kx1, (B, 3, N), jnp.float32)
    xyz2 = jax.random.normal(kx2, (B, 3, M), jnp.float32)
    points1 = jax.random.normal(kp1, (B, in_channel_points1, N), jnp.float32)
    points2 = jax.random.normal(kp2, (B, in_channel, M), jnp.float32)

    ws, bs = init_fp_params(kparam, in_channel, mlp, use_points1,
                            in_channel_points1, if_bn=True)

    out = pointnet_fp_module2(xyz1, xyz2, points1, points2, ws, bs,
                              use_points1=use_points1)
    out = jax.block_until_ready(out)
    assert out.shape == (B, mlp[-1], N)

    ref = ref_forward(xyz1, xyz2, points1, points2, ws, bs, use_points1)
    np.testing.assert_allclose(np.asarray(out), np.asarray(ref),
                               rtol=1e-3, atol=1e-3)
    print("KERNEL_OK")
</pallas_src>

<mosaic_0001>
module attributes {stable_mosaic.version = 11 : i64} {
  func.func @kernel(%arg0: i32, %arg1: i32, %arg2: memref<1x3x64xf32, #tpu.memory_space<vmem>>, %arg3: memref<1x16x3xf32, #tpu.memory_space<vmem>>, %arg4: memref<1x8x16xf32, #tpu.memory_space<vmem>>, %arg5: memref<1x4x64xf32, #tpu.memory_space<vmem>>, %arg6: memref<32x8xf32, #tpu.memory_space<vmem>>, %arg7: memref<32x4xf32, #tpu.memory_space<vmem>>, %arg8: memref<32x1xf32, #tpu.memory_space<vmem>>, %arg9: memref<32x32xf32, #tpu.memory_space<vmem>>, %arg10: memref<32x1xf32, #tpu.memory_space<vmem>>, %arg11: memref<16x32xf32, #tpu.memory_space<vmem>>, %arg12: memref<16x1xf32, #tpu.memory_space<vmem>>, %arg13: memref<1x16x64xf32, #tpu.memory_space<vmem>>) attributes {dimension_semantics = [#tpu.dimension_semantics<parallel>, #tpu.dimension_semantics<parallel>], iteration_bounds = array<i64: 2, 1>, scalar_prefetch = 0 : i64, scratch_operands = 0 : i64, tpu.core_type = #tpu.core_type<tc>, window_params = [{transform_indices = @transform_0, window_bounds = array<i64: 1, 3, 64>}, {transform_indices = @transform_1, window_bounds = array<i64: 1, 16, 3>}, {transform_indices = @transform_2, window_bounds = array<i64: 1, 8, 16>}, {transform_indices = @transform_3, window_bounds = array<i64: 1, 4, 64>}, {pipeline_mode = #tpu.pipeline_mode<synchronous>, transform_indices = @transform_4, window_bounds = array<i64: 32, 8>}, {pipeline_mode = #tpu.pipeline_mode<synchronous>, transform_indices = @transform_5, window_bounds = array<i64: 32, 4>}, {pipeline_mode = #tpu.pipeline_mode<synchronous>, transform_indices = @transform_6, window_bounds = array<i64: 32, 1>}, {pipeline_mode = #tpu.pipeline_mode<synchronous>, transform_indices = @transform_7, window_bounds = array<i64: 32, 32>}, {pipeline_mode = #tpu.pipeline_mode<synchronous>, transform_indices = @transform_8, window_bounds = array<i64: 32, 1>}, {pipeline_mode = #tpu.pipeline_mode<synchronous>, transform_indices = @transform_9, window_bounds = array<i64: 16, 32>}, {pipeline_mode = #tpu.pipeline_mode<synchronous>, transform_indices = @transform_10, window_bounds = array<i64: 16, 1>}, {transform_indices = @transform_11, window_bounds = array<i64: 1, 16, 64>}]} {
    %c0 = arith.constant 0 : index
    %c0_0 = arith.constant 0 : index
    %c0_1 = arith.constant 0 : index
    %0 = vector.load %arg2[%c0, %c0_0, %c0_1] : memref<1x3x64xf32, #tpu.memory_space<vmem>>, vector<1x3x64xf32>
    %1 = vector.shape_cast %0 : vector<1x3x64xf32> to vector<3x64xf32>
    %c0_2 = arith.constant 0 : index
    %c0_3 = arith.constant 0 : index
    %c0_4 = arith.constant 0 : index
    %2 = vector.load %arg3[%c0_2, %c0_3, %c0_4] : memref<1x16x3xf32, #tpu.memory_space<vmem>>, vector<1x16x3xf32>
    %3 = vector.shape_cast %2 : vector<1x16x3xf32> to vector<16x3xf32>
    %cst = arith.constant 0.000000e+00 : f32
    %4 = vector.broadcast %cst : f32 to vector<16x64xf32>
    %5 = vector.extract_strided_slice %3 {offsets = [0, 0], sizes = [16, 1], strides = [1, 1]} : vector<16x3xf32> to vector<16x1xf32>
    %6 = vector.extract_strided_slice %1 {offsets = [0, 0], sizes = [1, 64], strides = [1, 1]} : vector<3x64xf32> to vector<1x64xf32>
    %7 = vector.broadcast %5 : vector<16x1xf32> to vector<16x64xf32>
    %8 = vector.broadcast %6 : vector<1x64xf32> to vector<16x64xf32>
    %9 = arith.subf %7, %8 : vector<16x64xf32>
    %10 = arith.mulf %9, %9 : vector<16x64xf32>
    %11 = arith.addf %4, %10 : vector<16x64xf32>
    %12 = vector.extract_strided_slice %3 {offsets = [0, 1], sizes = [16, 1], strides = [1, 1]} : vector<16x3xf32> to vector<16x1xf32>
    %13 = vector.extract_strided_slice %1 {offsets = [1, 0], sizes = [1, 64], strides = [1, 1]} : vector<3x64xf32> to vector<1x64xf32>
    %14 = vector.broadcast %12 : vector<16x1xf32> to vector<16x64xf32>
    %15 = vector.broadcast %13 : vector<1x64xf32> to vector<16x64xf32>
    %16 = arith.subf %14, %15 : vector<16x64xf32>
    %17 = arith.mulf %16, %16 : vector<16x64xf32>
    %18 = arith.addf %11, %17 : vector<16x64xf32>
    %19 = vector.extract_strided_slice %3 {offsets = [0, 2], sizes = [16, 1], strides = [1, 1]} : vector<16x3xf32> to vector<16x1xf32>
    %20 = vector.extract_strided_slice %1 {offsets = [2, 0], sizes = [1, 64], strides = [1, 1]} : vector<3x64xf32> to vector<1x64xf32>
    %21 = vector.broadcast %19 : vector<16x1xf32> to vector<16x64xf32>
    %22 = vector.broadcast %20 : vector<1x64xf32> to vector<16x64xf32>
    %23 = arith.subf %21, %22 : vector<16x64xf32>
    %24 = arith.mulf %23, %23 : vector<16x64xf32>
    %25 = arith.addf %18, %24 : vector<16x64xf32>
    %26 = tpu.iota {dimensions = array<i32: 0>} : vector<16x64xi32>
    %cst_5 = arith.constant 0.000000e+00 : f32
    %27 = vector.broadcast %cst_5 : f32 to vector<16x64xf32>
    %cst_6 = arith.constant 0.000000e+00 : f32
    %28 = vector.broadcast %cst_6 : f32 to vector<1x64xf32>
    %cst_7 = arith.constant dense<0x7F800000> : vector<64xf32>
    %29 = vector.multi_reduction <minimumf>, %25, %cst_7 [0] : vector<16x64xf32> to vector<64xf32>
    %30 = vector.shape_cast %29 : vector<64xf32> to vector<1x64xf32>
    %31 = vector.broadcast %30 : vector<1x64xf32> to vector<16x64xf32>
    %32 = arith.cmpf oeq, %25, %31 : vector<16x64xf32>
    %c16_i32 = arith.constant 16 : i32
    %33 = vector.broadcast %c16_i32 : i32 to vector<16x64xi32>
    %34 = arith.select %32, %26, %33 : vector<16x64xi1>, vector<16x64xi32>
    %cst_8 = arith.constant dense<2147483647> : vector<64xi32>
    %35 = vector.multi_reduction <minsi>, %34, %cst_8 [0] : vector<16x64xi32> to vector<64xi32>
    %36 = vector.shape_cast %35 : vector<64xi32> to vector<1x64xi32>
    %37 = vector.broadcast %36 : vector<1x64xi32> to vector<16x64xi32>
    %38 = arith.cmpi eq, %26, %37 : vector<16x64xi32>
    %39 = math.sqrt %30 : vector<1x64xf32>
    %cst_9 = arith.constant 1.000000e-10 : f32
    %40 = vector.broadcast %cst_9 : f32 to vector<1x64xf32>
    %41 = arith.maximumf %39, %40 : vector<1x64xf32>
    %cst_10 = arith.constant 1.000000e+00 : f32
    %42 = vector.broadcast %cst_10 : f32 to vector<1x64xf32>
    %43 = arith.divf %42, %41 : vector<1x64xf32>
    %cst_11 = arith.constant 0.000000e+00 : f32
    %44 = vector.shape_cast %43 : vector<1x64xf32> to vector<1x64xf32>
    %45 = vector.broadcast %44 : vector<1x64xf32> to vector<16x64xf32>
    %46 = vector.broadcast %cst_11 : f32 to vector<16x64xf32>
    %47 = arith.select %38, %45, %46 : vector<16x64xi1>, vector<16x64xf32>
    %48 = arith.addf %27, %47 : vector<16x64xf32>
    %49 = arith.addf %28, %43 : vector<1x64xf32>
    %cst_12 = arith.constant 0x7F800000 : f32
    %50 = vector.broadcast %cst_12 : f32 to vector<16x64xf32>
    %51 = arith.select %38, %50, %25 : vector<16x64xi1>, vector<16x64xf32>
    %cst_13 = arith.constant dense<0x7F800000> : vector<64xf32>
    %52 = vector.multi_reduction <minimumf>, %51, %cst_13 [0] : vector<16x64xf32> to vector<64xf32>
    %53 = vector.shape_cast %52 : vector<64xf32> to vector<1x64xf32>
    %54 = vector.broadcast %53 : vector<1x64xf32> to vector<16x64xf32>
    %55 = arith.cmpf oeq, %51, %54 : vector<16x64xf32>
    %c16_i32_14 = arith.constant 16 : i32
    %56 = vector.broadcast %c16_i32_14 : i32 to vector<16x64xi32>
    %57 = arith.select %55, %26, %56 : vector<16x64xi1>, vector<16x64xi32>
    %cst_15 = arith.constant dense<2147483647> : vector<64xi32>
    %58 = vector.multi_reduction <minsi>, %57, %cst_15 [0] : vector<16x64xi32> to vector<64xi32>
    %59 = vector.shape_cast %58 : vector<64xi32> to vector<1x64xi32>
    %60 = vector.broadcast %59 : vector<1x64xi32> to vector<16x64xi32>
    %61 = arith.cmpi eq, %26, %60 : vector<16x64xi32>
    %62 = math.sqrt %53 : vector<1x64xf32>
    %cst_16 = arith.constant 1.000000e-10 : f32
    %63 = vector.broadcast %cst_16 : f32 to vector<1x64xf32>
    %64 = arith.maximumf %62, %63 : vector<1x64xf32>
    %cst_17 = arith.constant 1.000000e+00 : f32
    %65 = vector.broadcast %cst_17 : f32 to vector<1x64xf32>
    %66 = arith.divf %65, %64 : vector<1x64xf32>
    %cst_18 = arith.constant 0.000000e+00 : f32
    %67 = vector.shape_cast %66 : vector<1x64xf32> to vector<1x64xf32>
    %68 = vector.broadcast %67 : vector<1x64xf32> to vector<16x64xf32>
    %69 = vector.broadcast %cst_18 : f32 to vector<16x64xf32>
    %70 = arith.select %61, %68, %69 : vector<16x64xi1>, vector<16x64xf32>
    %71 = arith.addf %48, %70 : vector<16x64xf32>
    %72 = arith.addf %49, %66 : vector<1x64xf32>
    %cst_19 = arith.constant 0x7F800000 : f32
    %73 = vector.broadcast %cst_19 : f32 to vector<16x64xf32>
    %74 = arith.select %61, %73, %51 : vector<16x64xi1>, vector<16x64xf32>
    %cst_20 = arith.constant dense<0x7F800000> : vector<64xf32>
    %75 = vector.multi_reduction <minimumf>, %74, %cst_20 [0] : vector<16x64xf32> to vector<64xf32>
    %76 = vector.shape_cast %75 : vector<64xf32> to vector<1x64xf32>
    %77 = vector.broadcast %76 : vector<1x64xf32> to vector<16x64xf32>
    %78 = arith.cmpf oeq, %74, %77 : vector<16x64xf32>
    %c16_i32_21 = arith.constant 16 : i32
    %79 = vector.broadcast %c16_i32_21 : i32 to vector<16x64xi32>
    %80 = arith.select %78, %26, %79 : vector<16x64xi1>, vector<16x64xi32>
    %cst_22 = arith.constant dense<2147483647> : vector<64xi32>
    %81 = vector.multi_reduction <minsi>, %80, %cst_22 [0] : vector<16x64xi32> to vector<64xi32>
    %82 = vector.shape_cast %81 : vector<64xi32> to vector<1x64xi32>
    %83 = vector.broadcast %82 : vector<1x64xi32> to vector<16x64xi32>
    %84 = arith.cmpi eq, %26, %83 : vector<16x64xi32>
    %85 = math.sqrt %76 : vector<1x64xf32>
    %cst_23 = arith.constant 1.000000e-10 : f32
    %86 = vector.broadcast %cst_23 : f32 to vector<1x64xf32>
    %87 = arith.maximumf %85, %86 : vector<1x64xf32>
    %cst_24 = arith.constant 1.000000e+00 : f32
    %88 = vector.broadcast %cst_24 : f32 to vector<1x64xf32>
    %89 = arith.divf %88, %87 : vector<1x64xf32>
    %cst_25 = arith.constant 0.000000e+00 : f32
    %90 = vector.shape_cast %89 : vector<1x64xf32> to vector<1x64xf32>
    %91 = vector.broadcast %90 : vector<1x64xf32> to vector<16x64xf32>
    %92 = vector.broadcast %cst_25 : f32 to vector<16x64xf32>
    %93 = arith.select %84, %91, %92 : vector<16x64xi1>, vector<16x64xf32>
    %94 = arith.addf %71, %93 : vector<16x64xf32>
    %95 = arith.addf %72, %89 : vector<1x64xf32>
    %c0_26 = arith.constant 0 : index
    %c0_27 = arith.constant 0 : index
    %c0_28 = arith.constant 0 : index
    %96 = vector.load %arg4[%c0_26, %c0_27, %c0_28] : memref<1x8x16xf32, #tpu.memory_space<vmem>>, vector<1x8x16xf32>
    %97 = vector.shape_cast %96 : vector<1x8x16xf32> to vector<8x16xf32>
    %cst_29 = arith.constant dense<0.000000e+00> : vector<8x64xf32>
    %98 = tpu.matmul %97, %94, %cst_29 {dimension_numbers = #tpu.dot_dimension_numbers<[1], [0], [0], [1], [0, 0, 1, 1], [], []>} : vector<8x16xf32>, vector<16x64xf32>, vector<8x64xf32> -> vector<8x64xf32>
    %cst_30 = arith.constant 1.000000e+00 : f32
    %99 = vector.broadcast %cst_30 : f32 to vector<1x64xf32>
    %100 = arith.divf %99, %95 : vector<1x64xf32>
    %101 = vector.broadcast %100 : vector<1x64xf32> to vector<8x64xf32>
    %102 = arith.mulf %98, %101 : vector<8x64xf32>
    %c0_31 = arith.constant 0 : index
    %c0_32 = arith.constant 0 : index
    %103 = vector.load %arg6[%c0_31, %c0_32] : memref<32x8xf32, #tpu.memory_space<vmem>>, vector<32x8xf32>
    %c0_33 = arith.constant 0 : index
    %c0_34 = arith.constant 0 : index
    %104 = vector.load %arg7[%c0_33, %c0_34] : memref<32x4xf32, #tpu.memory_space<vmem>>, vector<32x4xf32>
    %c0_35 = arith.constant 0 : index
    %c0_36 = arith.constant 0 : index
    %105 = vector.load %arg8[%c0_35, %c0_36] : memref<32x1xf32, #tpu.memory_space<vmem>>, vector<32x1xf32>
    %cst_37 = arith.constant dense<0.000000e+00> : vector<32x64xf32>
    %106 = tpu.matmul %103, %102, %cst_37 {dimension_numbers = #tpu.dot_dimension_numbers<[1], [0], [0], [1], [0, 0, 1, 1], [], []>} : vector<32x8xf32>, vector<8x64xf32>, vector<32x64xf32> -> vector<32x64xf32>
    %c0_38 = arith.constant 0 : index
    %c0_39 = arith.constant 0 : index
    %c0_40 = arith.constant 0 : index
    %107 = vector.load %arg5[%c0_38, %c0_39, %c0_40] : memref<1x4x64xf32, #tpu.memory_space<vmem>>, vector<1x4x64xf32>
    %108 = vector.shape_cast %107 : vector<1x4x64xf32> to vector<4x64xf32>
    %cst_41 = arith.constant dense<0.000000e+00> : vector<32x64xf32>
    %109 = tpu.matmul %104, %108, %cst_41 {dimension_numbers = #tpu.dot_dimension_numbers<[1], [0], [0], [1], [0, 0, 1, 1], [], []>} : vector<32x4xf32>, vector<4x64xf32>, vector<32x64xf32> -> vector<32x64xf32>
    %110 = arith.addf %106, %109 : vector<32x64xf32>
    %111 = vector.broadcast %105 : vector<32x1xf32> to vector<32x64xf32>
    %112 = arith.addf %110, %111 : vector<32x64xf32>
    %cst_42 = arith.constant 0.000000e+00 : f32
    %113 = vector.broadcast %cst_42 : f32 to vector<32x64xf32>
    %114 = arith.maximumf %112, %113 : vector<32x64xf32>
    %c0_43 = arith.constant 0 : index
    %c0_44 = arith.constant 0 : index
    %115 = vector.load %arg9[%c0_43, %c0_44] : memref<32x32xf32, #tpu.memory_space<vmem>>, vector<32x32xf32>
    %c0_45 = arith.constant 0 : index
    %c0_46 = arith.constant 0 : index
    %116 = vector.load %arg10[%c0_45, %c0_46] : memref<32x1xf32, #tpu.memory_space<vmem>>, vector<32x1xf32>
    %cst_47 = arith.constant dense<0.000000e+00> : vector<32x64xf32>
    %117 = tpu.matmul %115, %114, %cst_47 {dimension_numbers = #tpu.dot_dimension_numbers<[1], [0], [0], [1], [0, 0, 1, 1], [], []>} : vector<32x32xf32>, vector<32x64xf32>, vector<32x64xf32> -> vector<32x64xf32>
    %118 = vector.broadcast %116 : vector<32x1xf32> to vector<32x64xf32>
    %119 = arith.addf %117, %118 : vector<32x64xf32>
    %cst_48 = arith.constant 0.000000e+00 : f32
    %120 = vector.broadcast %cst_48 : f32 to vector<32x64xf32>
    %121 = arith.maximumf %119, %120 : vector<32x64xf32>
    %c0_49 = arith.constant 0 : index
    %c0_50 = arith.constant 0 : index
    %122 = vector.load %arg11[%c0_49, %c0_50] : memref<16x32xf32, #tpu.memory_space<vmem>>, vector<16x32xf32>
    %c0_51 = arith.constant 0 : index
    %c0_52 = arith.constant 0 : index
    %123 = vector.load %arg12[%c0_51, %c0_52] : memref<16x1xf32, #tpu.memory_space<vmem>>, vector<16x1xf32>
    %cst_53 = arith.constant dense<0.000000e+00> : vector<16x64xf32>
    %124 = tpu.matmul %122, %121, %cst_53 {dimension_numbers = #tpu.dot_dimension_numbers<[1], [0], [0], [1], [0, 0, 1, 1], [], []>} : vector<16x32xf32>, vector<32x64xf32>, vector<16x64xf32> -> vector<16x64xf32>
    %125 = vector.broadcast %123 : vector<16x1xf32> to vector<16x64xf32>
    %126 = arith.addf %124, %125 : vector<16x64xf32>
    %c0_54 = arith.constant 0 : index
    %c0_55 = arith.constant 0 : index
    %c0_56 = arith.constant 0 : index
    %127 = vector.load %arg13[%c0_54, %c0_55, %c0_56] : memref<1x16x64xf32, #tpu.memory_space<vmem>>, vector<1x16x64xf32>
    %128 = vector.shape_cast %127 : vector<1x16x64xf32> to vector<16x64xf32>
    %129 = vector.shape_cast %126 : vector<16x64xf32> to vector<1x16x64xf32>
    tpu.vector_store %arg13[%c0_54, %c0_55, %c0_56], %129 {strides = array<i32>} : memref<1x16x64xf32, #tpu.memory_space<vmem>>, vector<1x16x64xf32>,
    return
  }
  func.func @transform_0(%arg0: i32, %arg1: i32) -> (i32, i32, i32) {
    %c0_i32 = arith.constant 0 : i32
    %c0_i32_0 = arith.constant 0 : i32
    return %arg0, %c0_i32, %arg1 : i32, i32, i32
  }
  func.func @transform_1(%arg0: i32, %arg1: i32) -> (i32, i32, i32) {
    %c0_i32 = arith.constant 0 : i32
    %c0_i32_0 = arith.constant 0 : i32
    %c0_i32_1 = arith.constant 0 : i32
    return %arg0, %c0_i32, %c0_i32_0 : i32, i32, i32
  }
  func.func @transform_2(%arg0: i32, %arg1: i32) -> (i32, i32, i32) {
    %c0_i32 = arith.constant 0 : i32
    %c0_i32_0 = arith.constant 0 : i32
    %c0_i32_1 = arith.constant 0 : i32
    return %arg0, %c0_i32, %c0_i32_0 : i32, i32, i32
  }
  func.func @transform_3(%arg0: i32, %arg1: i32) -> (i32, i32, i32) {
    %c0_i32 = arith.constant 0 : i32
    %c0_i32_0 = arith.constant 0 : i32
    return %arg0, %c0_i32, %arg1 : i32, i32, i32
  }
  func.func @transform_4(%arg0: i32, %arg1: i32) -> (i32, i32) {
    %c0_i32 = arith.constant 0 : i32
    %c0_i32_0 = arith.constant 0 : i32
    %c0_i32_1 = arith.constant 0 : i32
    return %c0_i32, %c0_i32_0 : i32, i32
  }
  func.func @transform_5(%arg0: i32, %arg1: i32) -> (i32, i32) {
    %c0_i32 = arith.constant 0 : i32
    %c0_i32_0 = arith.constant 0 : i32
    %c0_i32_1 = arith.constant 0 : i32
    return %c0_i32, %c0_i32_0 : i32, i32
  }
  func.func @transform_6(%arg0: i32, %arg1: i32) -> (i32, i32) {
    %c0_i32 = arith.constant 0 : i32
    %c0_i32_0 = arith.constant 0 : i32
    %c0_i32_1 = arith.constant 0 : i32
    return %c0_i32, %c0_i32_0 : i32, i32
  }
  func.func @transform_7(%arg0: i32, %arg1: i32) -> (i32, i32) {
    %c0_i32 = arith.constant 0 : i32
    %c0_i32_0 = arith.constant 0 : i32
    %c0_i32_1 = arith.constant 0 : i32
    return %c0_i32, %c0_i32_0 : i32, i32
  }
  func.func @transform_8(%arg0: i32, %arg1: i32) -> (i32, i32) {
    %c0_i32 = arith.constant 0 : i32
    %c0_i32_0 = arith.constant 0 : i32
    %c0_i32_1 = arith.constant 0 : i32
    return %c0_i32, %c0_i32_0 : i32, i32
  }
  func.func @transform_9(%arg0: i32, %arg1: i32) -> (i32, i32) {
    %c0_i32 = arith.constant 0 : i32
    %c0_i32_0 = arith.constant 0 : i32
    %c0_i32_1 = arith.constant 0 : i32
    return %c0_i32, %c0_i32_0 : i32, i32
  }
  func.func @transform_10(%arg0: i32, %arg1: i32) -> (i32, i32) {
    %c0_i32 = arith.constant 0 : i32
    %c0_i32_0 = arith.constant 0 : i32
    %c0_i32_1 = arith.constant 0 : i32
    return %c0_i32, %c0_i32_0 : i32, i32
  }
  func.func @transform_11(%arg0: i32, %arg1: i32) -> (i32, i32, i32) {
    %c0_i32 = arith.constant 0 : i32
    %c0_i32_0 = arith.constant 0 : i32
    return %arg0, %c0_i32, %arg1 : i32, i32, i32
  }
}

</mosaic_0001>

<bundles_post_ra>
// kernel: tpu_custom_call.1
= control target key start
LH: loop header
LB: loop body
LE: loop exit
PB: predicated region body
PF: predicated region fallthrough
CT: control target
= control target key end

     0   :  { %s1953_s0 = inlined_call_operand.vmem [shape: f32[2,3,64], index: 0, kind: input, shape index: {}]   ;;  %s1954_s1 = inlined_call_operand.vmem [shape: f32[2,16,3], index: 1, kind: input, shape index: {}]   ;;  %s1955_s2 = inlined_call_operand.vmem [shape: f32[2,8,16], index: 2, kind: input, shape index: {}]   ;;  %s1956_s3 = inlined_call_operand.vmem [shape: f32[2,4,64], index: 3, kind: input, shape index: {}]   ;;  %s1957_s4 = inlined_call_operand.vmem [shape: f32[32,8], index: 4, kind: input, shape index: {}]   ;;  %s1958_s5 = inlined_call_operand.vmem [shape: f32[32,4], index: 5, kind: input, shape index: {}]   ;;  %s1959_s6 = inlined_call_operand.vmem [shape: f32[32,1], index: 6, kind: input, shape index: {}]   ;;  %s1960_s7 = inlined_call_operand.vmem [shape: f32[32,32], index: 7, kind: input, shape index: {}]   ;;  %s1961_s8 = inlined_call_operand.vmem [shape: f32[32,1], index: 8, kind: input, shape index: {}]   ;;  %s1962_s9 = inlined_call_operand.vmem [shape: f32[16,32], index: 9, kind: input, shape index: {}]   ;;  %s1963_s10 = inlined_call_operand.vmem [shape: f32[16,1], index: 10, kind: input, shape index: {}]   ;;  %s1964_s11 = inlined_call_operand.hbm [shape: f32[2,16,64], index: 11, kind: output, shape index: {}]  }
   0x1   :  { %1965 = sst [smem:[#allocation5_spill]] %s1953_s0 }
   0x2   :  { %1966 = sst [smem:[#allocation6_spill]] %s1954_s1 }
   0x3   :  { %16 = vsyncpa [#allocation3], 0 }
   0x4   :  { %18 = vsyncpa [#allocation3 + $0x1], 0  ;;  %s1680_s17 = smov 0   ;;  %s1682_s18 = smov 0  }
   0x5   :  { %s1684_s19 = smov 0   ;;  %s1686_s20 = smov 0  }
   0x6   :  { %s1688_s21 = smov 0   ;;  %s1690_s22 = smov 0  }
   0x7 LB: > { %s1343_s23 = sadd.s32 4294967295, %s1610_s22   ;;  %s1344_s24 = sadd.s32 4294967294, %s1610_s22   ;;  %s1610_s22 = sphi %s1690_s22, %s24_s22   ;;  %s1606_s21 = sphi %s1688_s21, %s1975_s21   ;;  %s1602_s20 = sphi %s1686_s20, %s1974_s20   ;;  %s1598_s19 = sphi %s1684_s19, %s1973_s19   ;;  %s1594_s18 = sphi %s1682_s18, %s1972_s18   ;;  %s1590_s17 = sphi %s1680_s17, %s1971_s17  }
   0x8   : > { %s36_s25 = sadd.s32 1, %s1606_s21  ;;  %s300_s26 = sadd.s32 1, %s1598_s19 }
   0x9   : > { %p38_p0 = scmp.ge.s32.totalorder %s36_s25, 2  ;;  %p310_p1 = scmp.ne.s32.totalorder %s1598_s19, %s1594_s18 }
   0xa   : > { %p311_p2 = scmp.eq.s32.totalorder %s1343_s23, 1  ;;  %p316_p3 = scmp.ne.s32.totalorder %s1594_s18, %s1590_s17 }
   0xb   : > { %s1977_s25 = smov (%p38_p0, %s36_s25), 0  ;;  %p317_p5 = scmp.eq.s32.totalorder %s1344_s24, 1 }
   0xc   : > { %p1720_p4 = por %p311_p2, %p310_p1  ;;  %s295_s28 = ssub.s32 %s1606_s21, %s1977_s25 }
   0xd   : > { %p1347_p6 = scmp.ge.s32.totalorder %s1610_s22, 1  ;;  %p298_p7 = scmp.eq.s32.totalorder %s295_s28, 0 }
   0xe   : > { %p1727_p8 = por %p317_p5, %p316_p3  ;;  %p391_p9 = scmp.lt.s32.totalorder %s1610_s22, 3 }
   0xf   : > { %s1733_s30 = scalar_select %p298_p7, %s1598_s19, %s300_s26  }
  0x10   : > { %p392_p10 = pnand %p1347_p6, %p391_p9 }
  0x11   : > { %p449_p11 = scmp.lt.s32.totalorder (!%p392_p10), %s1602_s20, 1  ;;  %s1969_s1 = sld [smem:[#allocation6_spill]] (!%p392_p10) }
  0x12   : > { %395 = sbr.rel (%p392_p10) target bundleno = 1118 (0x45e), region = 64  ;;  %s1970_s0 = sld [smem:[#allocation5_spill]] (!%p392_p10) }
  0x13   : > { %s446_s26 = sand.u32 (!%p392_p10), 1, %s1594_s18   ;;  %s1617_s24 = smov (!%p392_p10), [#allocation2]  }
  0x17   : > { %v1612_v0 = vmov 1   ;;  %v1613_v1 = vmov 0   ;;  %s1737_s12 = scalar_select %p449_p11, %s1602_s20, 1  ;;  %v1614_v4 = vmov 2   ;;  %v1615_v5 = vmov 0.0  }
  0x18   : > { %1515 = vset.pattern.permute.xlu1 %v1612_v0  ;;  %1514 = vset.pattern.permute.xlu0 %v1613_v1  ;;  %v485_v6 = vlaneseq  ;;  %vm1616_vm0 = vmmov 0   ;;  %vm534_vm1 = vcmask 523264  }
  0x19   : > { %s1375_s13 = sshll.u32 %s1737_s12, 4  ;;  %1404 = vmatprep.subr.mxu0 %v1615_v5  ;;  %s1349_s23 = sshll.u32 %s1737_s12, 2  ;;  %1408 = vmatprep.mubr.msk.f32.mxu0 %vm1616_vm0, %v1615_v5 }
  0x1a   : > { %s460_s16 = scalar_lea.vmem %s1969_s1, %s1375_s13  ;;  %v1745_v7 = vshrl.u32 %v485_v6, 7  ;;  %s455_s28 = scalar_lea.vmem %s1970_s0, %s1349_s23 }
  0x1b   : > { %v473_v2 = vld [vmem:[%s460_s16] sm:$0xff]  ;;  %v474_v3 = vld [vmem:[%s460_s16 + $0x8] sm:$0xff]  ;;  %s1352_s13 = sshll.u32 %s1737_s12, 3  ;;  %s1376_s0 = sshll.u32 %s1602_s20, 8 }
  0x1c   : > { %496 = vperm.xlu1 %1515, %v473_v2   ;;  %477 = vperm.xlu0 %1514, %v473_v2   ;;  %v505_v8 = vsub.s32 1, %v1745_v7  ;;  %v487_v9 = vsub.s32 0, %v1745_v7  ;;  %v472_v10 = vld [vmem:[%s455_s28] sm:$0x7]  ;;  %v523_v15 = vsub.s32 2, %v1745_v7  ;;  %v1759_v45 = vadd.s32 8, %v1745_v7  ;;  %s464_s16 = scalar_lea.vmem %s1955_s2, %s1352_s13  ;;  %s471_s28 = scalar_lea.vmem %s1956_s3, %s1349_s23 }
  0x1d   : > { %s1905_s12 = scalar_lea.hbm %s1964_s11, %s1376_s0  ;;  %s1908_s23 = scalar_lea.sflag [#allocation3], %s446_s26 }
  0x1e   : > { %v506_v12 = vrot.slane %v472_v10, %v505_v8  ;;  %v488_v14 = vrot.slane %v472_v10, %v487_v9  ;;  %v524_v22 = vrot.slane %v472_v10, %v523_v15 }
  0x20   : > { %500 = vperm.xlu1 %1515, %v474_v3   ;;  %482 = vperm.xlu0 %1514, %v474_v3  }
  0x24   : > { %1517 = vset.pattern.permute.xlu1 %v1614_v4  ;;  %1516 = vset.pattern.permute.xlu0 %v1614_v4 }
  0x25   : > { %518 = vperm.xlu1 %1517, %v474_v3   ;;  %514 = vperm.xlu0 %1516, %v473_v2  }
  0x29   : > { %1518 = vset.pattern.permute.xlu1 %v1613_v1  ;;  %1519 = vset.pattern.permute.xlu0 %v1613_v1 }
  0x97   : > { %v497_v11 = vpop.permute.xlu1 %496  ;;  %v478_v13 = vpop.permute.xlu0 %477 }
  0x98   : > { %v507_v16 = vsub.f32 %v497_v11, %v506_v12  ;;  %v489_v17 = vsub.f32 %v478_v13, %v488_v14 }
  0x9a   : > { %v509_v23 = vmul.f32 %v507_v16, %v507_v16  ;;  %v491_v24 = vmul.f32 %v489_v17, %v489_v17 }
  0x9b   : > { %v501_v18 = vpop.permute.xlu1 %500  ;;  %v483_v19 = vpop.permute.xlu0 %482 }
  0x9c   : > { %v508_v20 = vsub.f32 %v501_v18, %v506_v12  ;;  %v490_v21 = vsub.f32 %v483_v19, %v488_v14  ;;  %v511_v31 = vadd.f32 %v509_v23, %v491_v24 }
  0x9e   : > { %v510_v25 = vmul.f32 %v508_v20, %v508_v20  ;;  %v492_v26 = vmul.f32 %v490_v21, %v490_v21 }
  0xa0   : > { %v519_v27 = vpop.permute.xlu1 %518  ;;  %v515_v28 = vpop.permute.xlu0 %514  ;;  %v512_v32 = vadd.f32 %v510_v25, %v492_v26 }
  0xa1   : > { %v526_v29 = vsub.f32 %v519_v27, %v524_v22  ;;  %v525_v30 = vsub.f32 %v515_v28, %v524_v22 }
  0xa3   : > { %v528_v33 = vmul.f32 %v526_v29, %v526_v29  ;;  %v527_v34 = vmul.f32 %v525_v30, %v525_v30 }
  0xa5   : > { %v530_v35 = vadd.f32 %v528_v33, %v512_v32  ;;  %v529_v36 = vadd.f32 %v527_v34, %v511_v31 }
  0xa7   : > { %v536_v37 = vsel %vm534_vm1, %v530_v35, inf  ;;  %v535_v38 = vsel %vm534_vm1, %v529_v36, inf }
  0xa8   : > { %v537_v39 = vmin.f32 %v535_v38, %v536_v37 }
  0xaa   : > { %v538_v40 = vrot.slane %v537_v39, 4 }
  0xac   : > { %v539_v41 = vmin.f32 %v537_v39, %v538_v40 }
  0xae   : > { %v540_v42 = vrot.slane %v539_v41, 2 }
  0xb0   : > { %v541_v43 = vmin.f32 %v539_v41, %v540_v42 }
  0xb2   : > { %v542_v44 = vrot.slane %v541_v43, 1 }
  0xb4   : > { %v543_v46 = vmin.f32 %v541_v43, %v542_v44 }
  0xb6   : > { %vm544_vm2 = vcmp.eq.f32.partialorder %v529_v36, %v543_v46  ;;  %vm545_vm3 = vcmp.eq.f32.partialorder %v530_v35, %v543_v46  ;;  %1520 = vrsqrt.f32 %v543_v46  ;;  %vm565_vm8 = vcmp.eq.f32.partialorder %v543_v46, inf }
  0xb7   : > { %v546_v47 = vsel %vm544_vm2, %v1745_v7, 16  ;;  %v547_v48 = vsel %vm545_vm3, %v1759_v45, 16  ;;  %v568_v59 = vand.u32 2147483648, %v543_v46  ;;  %vm567_vm9 = vcmp.eq.f32.partialorder %v543_v46, 0.0 }
  0xb8   : > { %v548_v49 = vsel %vm534_vm1, %v546_v47, 2147483647  ;;  %v549_v50 = vsel %vm534_vm1, %v547_v48, 2147483647 }
  0xb9   : > { %vm550_vm4 = vcmp.lt.s32.totalorder %v548_v49, %v549_v50 }
  0xba   : > { %v551_v51 = vsel %vm550_vm4, %v548_v49, %v549_v50 }
  0xbb   : > { %v552_v52 = vrot.slane %v551_v51, 4 }
  0xbd   : > { %vm553_vm5 = vcmp.lt.s32.totalorder %v551_v51, %v552_v52 }
  0xbe   : > { %v554_v53 = vsel %vm553_vm5, %v551_v51, %v552_v52 }
  0xbf   : > { %v555_v54 = vrot.slane %v554_v53, 2 }
  0xc1   : > { %vm556_vm6 = vcmp.lt.s32.totalorder %v554_v53, %v555_v54 }
  0xc2   : > { %v557_v55 = vsel %vm556_vm6, %v554_v53, %v555_v54 }
  0xc3   : > { %v1521_v56 = vpop.eup %1520  ;;  %v558_v57 = vrot.slane %v557_v55, 1 }
  0xc4   : > { %v564_v58 = vmul.f32 %v1521_v56, %v543_v46 }
  0xc5   : > { %vm559_vm7 = vcmp.lt.s32.totalorder %v557_v55, %v558_v57 }
  0xc6   : > { %v560_v60 = vsel %vm559_vm7, %v557_v55, %v558_v57  ;;  %v566_v61 = vsel %vm565_vm8, %v543_v46, %v564_v58 }
  0xc7   : > { %vm561_vm10 = vcmp.eq.s32.totalorder %v1745_v7, %v560_v60  ;;  %vm562_vm11 = vcmp.eq.s32.totalorder %v1759_v45, %v560_v60  ;;  %v569_v62 = vsel %vm567_vm9, %v568_v59, %v566_v61 }
  0xc8   : > { %v570_v63 = vmax.f32 %v569_v62, 1e-10  ;;  %v578_v0 = vsel %vm561_vm10, inf, %v529_v36  ;;  %v579_v1 = vsel %vm562_vm11, inf, %v530_v35 }
  0xc9   : > { %v580_v2 = vsel %vm534_vm1, %v578_v0, inf  ;;  %v581_v3 = vsel %vm534_vm1, %v579_v1, inf }
  0xca   : > { %1522 = vrcp.f32 %v570_v63  ;;  %v582_v4 = vmin.f32 %v580_v2, %v581_v3 }
  0xcc   : > { %v583_v6 = vrot.slane %v582_v4, 4 }
  0xce   : > { %v584_v8 = vmin.f32 %v582_v4, %v583_v6 }
  0xd0   : > { %v585_v9 = vrot.slane %v584_v8, 2 }
  0xd2   : > { %v586_v10 = vmin.f32 %v584_v8, %v585_v9 }
  0xd4   : > { %v587_v11 = vrot.slane %v586_v10, 1 }
  0xd6   : > { %v588_v12 = vmin.f32 %v586_v10, %v587_v11 }
  0xd7   : > { %v1523_v13 = vpop.eup %1522 }
  0xd8   : > { %v1775_v14 = vsel %vm562_vm11, %v1523_v13, 0.0  ;;  %vm589_vm12 = vcmp.eq.f32.partialorder %v578_v0, %v588_v12  ;;  %vm590_vm13 = vcmp.eq.f32.partialorder %v579_v1, %v588_v12  ;;  %1524 = vrsqrt.f32 %v588_v12 }
  0xd9   : > { %v591_v15 = vsel %vm589_vm12, %v1745_v7, 16  ;;  %v592_v16 = vsel %vm590_vm13, %v1759_v45, 16  ;;  %v1783_v19 = vsel %vm561_vm10, %v1523_v13, 0.0  ;;  %vm610_vm3 = vcmp.eq.f32.partialorder %v588_v12, inf }
  0xda   : > { %v593_v17 = vsel %vm534_vm1, %v591_v15, 2147483647  ;;  %v594_v18 = vsel %vm534_vm1, %v592_v16, 2147483647  ;;  %v613_v28 = vand.u32 2147483648, %v588_v12  ;;  %vm612_vm4 = vcmp.eq.f32.partialorder %v588_v12, 0.0 }
  0xdb   : > { %vm595_vm14 = vcmp.lt.s32.totalorder %v593_v17, %v594_v18  ;;  %v753_v15 = vld [vmem:[%s1958_s5 + $0x18] sm:$0xff] }
  0xdc   : > { %v596_v20 = vsel %vm595_vm14, %v593_v17, %v594_v18  ;;  %v757_v16 = vld [vmem:[%s1959_s6 + $0x18] sm:$0xff]  ;;  %v756_v17 = vld [vmem:[%s1959_s6 + $0x10] sm:$0xff]  ;;  %v755_v18 = vld [vmem:[%s1959_s6 + $0x8] sm:$0xff] }
  0xdd   : > { %v597_v21 = vrot.slane %v596_v20, 4  ;;  %976 = vperm.xlu1 %1518, %v757_v16   ;;  %971 = vperm.xlu0 %1519, %v756_v17  }
  0xdf   : > { %vm598_vm15 = vcmp.lt.s32.totalorder %v596_v20, %v597_v21 }
  0xe0   : > { %v599_v22 = vsel %vm598_vm15, %v596_v20, %v597_v21  ;;  %v754_v20 = vld [vmem:[%s1959_s6] sm:$0xff]  ;;  %v992_v21 = vld [vmem:[%s1961_s8 + $0x8] sm:$0xff] }
  0xe1   : > { %v600_v23 = vrot.slane %v599_v22, 2  ;;  %966 = vperm.xlu1 %1518, %v755_v18  }
  0xe3   : > { %vm601_vm0 = vcmp.lt.s32.totalorder %v599_v22, %v600_v23 }
  0xe4   : > { %v602_v24 = vsel %vm601_vm0, %v599_v22, %v600_v23  ;;  %v993_v22 = vld [vmem:[%s1961_s8 + $0x10] sm:$0xff]  ;;  %v1119_v23 = vld [vmem:[%s1963_s10] sm:$0xff] }
  0xe5   : > { %v1525_v25 = vpop.eup %1524  ;;  %v603_v26 = vrot.slane %v602_v24, 1  ;;  %961 = vperm.xlu1 %1518, %v754_v20  }
  0xe6   : > { %v609_v27 = vmul.f32 %v1525_v25, %v588_v12  ;;  %v1120_v25 = vld [vmem:[%s1963_s10 + $0x8] sm:$0xff] }
  0xe7   : > { %vm604_vm2 = vcmp.lt.s32.totalorder %v602_v24, %v603_v26 }
  0xe8   : > { %v605_v29 = vsel %vm604_vm2, %v602_v24, %v603_v26  ;;  %v611_v30 = vsel %vm610_vm3, %v588_v12, %v609_v27  ;;  %v668_v12 = vld [vmem:[%s464_s16] sm:$0xff]  ;;  %vm669_vm2 = vcmask 130048   ;;  %vm772_vm3 = vcmask 1043456  }
  0xe9   : > { %vm606_vm5 = vcmp.eq.s32.totalorder %v1745_v7, %v605_v29  ;;  %vm607_vm6 = vcmp.eq.s32.totalorder %v1759_v45, %v605_v29  ;;  %v614_v31 = vsel %vm612_vm4, %v613_v28, %v611_v30  ;;  %vm759_vm4 = vcmask 31744   ;;  %1007 = vperm.xlu1 %1518, %v993_v22   ;;  %v991_v24 = vld [vmem:[%s1961_s8] sm:$0xff]  ;;  %v747_v30 = vld [vmem:[%s1957_s4 + $0x8] sm:$0xff] }
  0xea   : > { %v615_v32 = vmax.f32 %v614_v31, 1e-10  ;;  %v623_v33 = vsel %vm606_vm5, inf, %v578_v0  ;;  %v624_v34 = vsel %vm607_vm6, inf, %v579_v1  ;;  %v748_v31 = vld [vmem:[%s1957_s4 + $0x10] sm:$0xff] }
  0xeb   : > { %v625_v35 = vsel %vm534_vm1, %v623_v33, inf  ;;  %v626_v36 = vsel %vm534_vm1, %v624_v34, inf }
  0xec   : > { %v627_v37 = vmin.f32 %v625_v35, %v626_v36  ;;  %1526 = vrcp.f32 %v615_v32  ;;  %v749_v32 = vld [vmem:[%s1957_s4 + $0x18] sm:$0xff] }
  0xed   : > { %997 = vperm.xlu1 %1518, %v991_v24  }
  0xee   : > { %v628_v38 = vrot.slane %v627_v37, 4 }
  0xf0   : > { %v629_v39 = vmin.f32 %v627_v37, %v628_v38 }
  0xf1   : > { %1128 = vperm.xlu1 %1518, %v1120_v25  }
  0xf2   : > { %v630_v40 = vrot.slane %v629_v39, 2 }
  0xf4   : > { %v631_v41 = vmin.f32 %v629_v39, %v630_v40 }
  0xf6   : > { %v632_v42 = vrot.slane %v631_v41, 1 }
  0xf8   : > { %v633_v43 = vmin.f32 %v631_v41, %v632_v42 }
  0xf9   : > { %v1527_v44 = vpop.eup %1526 }
  0xfa   : > { %vm634_vm7 = vcmp.eq.f32.partialorder %v623_v33, %v633_v43  ;;  %vm635_vm8 = vcmp.eq.f32.partialorder %v624_v34, %v633_v43  ;;  %1528 = vrsqrt.f32 %v633_v43  ;;  %v622_v50 = vadd.f32 %v1527_v44, %v1523_v13  ;;  %v751_v13 = vld [vmem:[%s1958_s5 + $0x8] sm:$0xff]  ;;  %v987_v33 = vld [vmem:[%s1960_s7] sm:$0xff] }
  0xfb   : > { %v636_v46 = vsel %vm634_vm7, %v1745_v7, 16  ;;  %v637_v47 = vsel %vm635_vm8, %v1759_v45, 16  ;;  %vm655_vm11 = vcmp.eq.f32.partialorder %v633_v43, inf  ;;  %v658_v57 = vand.u32 2147483648, %v633_v43 }
  0xfc   : > { %v638_v48 = vsel %vm534_vm1, %v636_v46, 2147483647  ;;  %v639_v49 = vsel %vm534_vm1, %v637_v47, 2147483647  ;;  %vm657_vm12 = vcmp.eq.f32.partialorder %v633_v43, 0.0  ;;  %v619_v63 = vsel %vm607_vm6, %v1527_v44, 0.0 }
  0xfd   : > { %vm640_vm9 = vcmp.lt.s32.totalorder %v638_v48, %v639_v49  ;;  %v618_v1 = vsel %vm606_vm5, %v1527_v44, 0.0  ;;  %v621_v3 = vadd.f32 %v619_v63, %v1775_v14  ;;  %vm861_vm5 = vcmask 64512   ;;  %v752_v14 = vld [vmem:[%s1958_s5 + $0x10] sm:$0xff] }
  0xfe   : > { %v641_v51 = vsel %vm640_vm9, %v638_v48, %v639_v49  ;;  %v620_v10 = vadd.f32 %v618_v1, %v1783_v19  ;;  %v994_v19 = vld [vmem:[%s1961_s8 + $0x18] sm:$0xff]  ;;  %vm1015_vm6 = vcmask 261120  }
  0xff   : > { %v642_v52 = vrot.slane %v641_v51, 4  ;;  %1012 = vperm.xlu0 %1519, %v994_v19  }
 0x101   : > { %vm643_vm10 = vcmp.lt.s32.totalorder %v641_v51, %v642_v52 }
 0x102   : > { %v644_v53 = vsel %vm643_vm10, %v641_v51, %v642_v52 }
 0x103   : > { %v645_v55 = vrot.slane %v644_v53, 2  ;;  %1002 = vperm.xlu0 %1519, %v992_v21  }
 0x105   : > { %vm646_vm13 = vcmp.lt.s32.totalorder %v644_v53, %v645_v55 }
 0x106   : > { %v647_v61 = vsel %vm646_vm13, %v644_v53, %v645_v55 }
 0x107   : > { %v1529_v54 = vpop.eup %1528  ;;  %v648_v62 = vrot.slane %v647_v61, 1  ;;  %1123 = vperm.xlu0 %1519, %v1119_v23  }
 0x108   : > { %v654_v56 = vmul.f32 %v1529_v54, %v633_v43 }
 0x109   : > { %vm649_vm14 = vcmp.lt.s32.totalorder %v647_v61, %v648_v62 }
 0x10a   : > { %v656_v58 = vsel %vm655_vm11, %v633_v43, %v654_v56  ;;  %v650_v0 = vsel %vm649_vm14, %v647_v61, %v648_v62  ;;  %v990_v61 = vld [vmem:[%s1960_s7 + $0x18] sm:$0xff]  ;;  %v1117_v62 = vld [vmem:[%s1962_s9] sm:$0xff] }
 0x10b   : > { %v659_v59 = vsel %vm657_vm12, %v658_v57, %v656_v58  ;;  %vm651_vm15 = vcmp.eq.s32.totalorder %v1745_v7, %v650_v0  ;;  %vm652_vm0 = vcmp.eq.s32.totalorder %v1759_v45, %v650_v0  ;;  %v758_v7 = vld [vmem:[%s471_s28] sm:$0xf]  ;;  %s1348_s28 = sshll.u32 %s446_s26, 4 }
 0x10c   : > { %v660_v60 = vmax.f32 %v659_v59, 1e-10  ;;  %v750_v45 = vld [vmem:[%s1958_s5] sm:$0xff]  ;;  %1411 = vmatprep.subr.msk.mxu1 %vm772_vm3, %v758_v7  ;;  %v988_v59 = vld [vmem:[%s1960_s7 + $0x8] sm:$0xff]  ;;  %s448_s13 = scalar_lea.vmem [#allocation2], %s1348_s28  ;;  %s1538_s28 = sshll.u32 %s1617_s24, 4  ;;  %s1539_s28 = int_to_ptr.vmem [resolvable:$false] %s1538_s28 }
 0x10d   : > { %1413 = vmatprep.mubr.msk.f32.mxu1 %vm759_vm4, %v750_v45  ;;  %1412 = vmatpush3.msk.msra.mxu1 %vm772_vm3, %v758_v7  ;;  %s1229_s14 = sshll.u32 %s448_s13, 4  ;;  %s1540_s1 = scalar_lea.vmem %s1539_s28, 512  ;;  %s1899_s14 = int_to_ptr.vmem [resolvable:$true] %s1229_s14 }
 0x10e   : > { %1530 = vrcp.f32 %v660_v60  ;;  %1414 = vmatmul.mubr.msk.f32.vlgmr.msra.gmra.mxu1 %vm759_vm4, %v751_v13  ;;  %v989_v60 = vld [vmem:[%s1960_s7 + $0x10] sm:$0xff]  ;;  %s1534_s20 = scalar_lea.vmem %s1899_s14, 256  ;;  %p1541_p1 = scmp.lt.s32.totalorder %s1899_s14, %s1539_s28 }
 0x10f   : > { %1416 = vmatprep.mubr.msk.f32.mxu1 %vm759_vm4, %v752_v14  ;;  %v1118_v14 = vld [vmem:[%s1962_s9 + $0x8] sm:$0xff]  ;;  %p1535_p12 = scmp.ne.s32.totalorder %s1899_s14, %s1534_s20  ;;  %p1542_p2 = scmp.lt.s32.totalorder %s1540_s1, %s1534_s20 }
 0x111   : > { %p1536_p13 = pnand %p1535_p12, %p1720_p4  ;;  %p1543_p3 = por %p1542_p2, %p1541_p1 }
 0x112   : > { %1417 = vmatmul.mubr.msk.f32.gmra.mxu1 %vm759_vm4, %v753_v15 }
 0x113   : > { %1435 = vmatprep.mubr.msk.f32.mxu1 %vm1015_vm6, %v987_v33  ;;  %p1537_p0 = pneg %p1536_p13 }
 0x115   : > { %p1544_p5 = pnand %p1543_p3, %p1537_p0 }
 0x11b   : > { %v1531_v2 = vpop.eup %1530 }
 0x11c   : > { %v664_v4 = vsel %vm652_vm0, %v1531_v2, 0.0  ;;  %v663_v6 = vsel %vm651_vm15, %v1531_v2, 0.0  ;;  %v667_v8 = vadd.f32 %v1531_v2, %v622_v50 }
 0x11d   : > { %v666_v9 = vadd.f32 %v664_v4, %v621_v3  ;;  %v665_v11 = vadd.f32 %v663_v6, %v620_v10 }
 0x11e   : > { %1532 = vrcp.f32 %v667_v8 }
 0x11f   : > { %1405 = vmatpush3.msra.mxu0 %v666_v9 }
 0x120   : > { %1406 = vmatprep.subr.mxu0 %v1615_v5  ;;  %v746_v5 = vld [vmem:[%s1957_s4] sm:$0xff] }
 0x121   : > { %1407 = vmatpush3.msra.mxu0 %v665_v11 }
 0x122   : > { %1409 = vmatmul.mubr.msk.f32.vlgmr.msra.gmra.mxu0 %vm669_vm2, %v668_v12 }
 0x123   : > { %1421 = vmatprep.mubr.msk.f32.mxu0 %vm861_vm5, %v746_v5 }
 0x12b   : > { %v1533_v26 = vpop.eup %1532 }
 0x158   : > { %v977_v35 = vpop.permute.xlu1 %976  ;;  %v972_v50 = vpop.permute.xlu0 %971 }
 0x15c   : > { %v967_v40 = vpop.permute.xlu1 %966 }
 0x160   : > { %v962_v54 = vpop.permute.xlu1 %961 }
 0x164   : > { %v1008_v1 = vpop.permute.xlu1 %1007 }
 0x168   : > { %v998_v12 = vpop.permute.xlu1 %997 }
 0x16c   : > { %v1129_v15 = vpop.permute.xlu1 %1128 }
 0x17a   : > { %v1013_v63 = vpop.permute.xlu0 %1012 }
 0x17e   : > { %v1003_v6 = vpop.permute.xlu0 %1002 }
 0x182   : > { %v1124_v18 = vpop.permute.xlu0 %1123 }
 0x1ce   : > { %v1415_v34 = vpop.f32.mrf.mxu1 }
 0x1d0   : > { %v842_v36 = vpop.f32.mrf.mxu1 }
 0x1d2   : > { %v1418_v39 = vpop.f32.mrf.mxu1 }
 0x1d4   : > { %v852_v44 = vpop.f32.mrf.mxu1 }
 0x1e2   : > { %v739_v27 = vpop.f32.mrf.mxu0 }
 0x1e3   : > { %v745_v28 = vmul.f32 %v1533_v26, %v739_v27 }
 0x1e4   : > { %v1410_v29 = vpop.f32.mrf.mxu0 }
 0x1e5   : > { %1419 = vmatprep.subr.mxu0 %v745_v28 }
 0x1e6   : > { %1420 = vmatpush3.msra.mxu0 %v745_v28 }
 0x1e7   : > { %1422 = vmatmul.mubr.msk.f32.vlgmr.msra.gmra.mxu0 %vm861_vm5, %v747_v30 }
 0x1e8   : > { %1424 = vmatprep.mubr.msk.f32.mxu0 %vm861_vm5, %v748_v31 }
 0x1eb   : > { %1425 = vmatmul.mubr.msk.f32.gmra.mxu0 %vm861_vm5, %v749_v32 }
 0x1ec   : > { %1449 = vmatprep.mubr.msk.f32.mxu0 %vm1015_vm6, %v1117_v62 }
 0x2a7   : > { %v1423_v37 = vpop.f32.mrf.mxu0 }
 0x2a8   : > { %v946_v42 = vadd.f32 %v1423_v37, %v1415_v34 }
 0x2a9   : > { %v940_v38 = vpop.f32.mrf.mxu0 }
 0x2aa   : > { %v941_v47 = vadd.f32 %v940_v38, %v842_v36  ;;  %v980_v51 = vadd.f32 %v967_v40, %v946_v42 }
 0x2ab   : > { %v1426_v41 = vpop.f32.mrf.mxu0 }
 0x2ac   : > { %v956_v43 = vadd.f32 %v1426_v41, %v1418_v39  ;;  %v979_v55 = vadd.f32 %v962_v54, %v941_v47  ;;  %v984_v57 = vmax.f32 %v980_v51, 0.0 }
 0x2ad   : > { %v950_v46 = vpop.f32.mrf.mxu0 }
 0x2ae   : > { %v982_v48 = vadd.f32 %v977_v35, %v956_v43  ;;  %v951_v49 = vadd.f32 %v950_v46, %v852_v44  ;;  %v983_v58 = vmax.f32 %v979_v55, 0.0 }
 0x2b0   : > { %v986_v52 = vmax.f32 %v982_v48, 0.0  ;;  %v981_v53 = vadd.f32 %v972_v50, %v951_v49 }
 0x2b2   : > { %v985_v56 = vmax.f32 %v981_v53, 0.0  ;;  %1427 = vmatprep.subr.mxu1 %v986_v52 }
 0x2b3   : > { %1428 = vmatpush3.msra.mxu1 %v986_v52 }
 0x2b4   : > { %1429 = vmatprep.subr.mxu1 %v985_v56 }
 0x2b5   : > { %1430 = vmatpush3.msra.mxu1 %v985_v56 }
 0x2b6   : > { %1431 = vmatprep.subr.mxu1 %v984_v57 }
 0x2b7   : > { %1432 = vmatpush3.msra.mxu1 %v984_v57 }
 0x2b8   : > { %1433 = vmatprep.subr.mxu1 %v983_v58 }
 0x2b9   : > { %1434 = vmatpush3.msra.mxu1 %v983_v58 }
 0x2ba   : > { %1436 = vmatmul.mubr.msk.f32.vlgmr.msra.gmra.mxu1 %vm1015_vm6, %v988_v59 }
 0x2bb   : > { %1438 = vmatprep.mubr.msk.f32.mxu1 %vm1015_vm6, %v989_v60 }
 0x2be   : > { %1439 = vmatmul.mubr.msk.f32.gmra.mxu1 %vm1015_vm6, %v990_v61 }
 0x37a   : > { %v1437_v0 = vpop.f32.mrf.mxu1 }
 0x37b   : > { %v1100_v9 = vadd.f32 %v1437_v0, %v1003_v6 }
 0x37c   : > { %v1094_v2 = vpop.f32.mrf.mxu1 }
 0x37d   : > { %v1095_v7 = vadd.f32 %v1094_v2, %v998_v12  ;;  %v1114_v5 = vmax.f32 %v1100_v9, 0.0 }
 0x37e   : > { %v1440_v3 = vpop.f32.mrf.mxu1 }
 0x37f   : > { %v1110_v4 = vadd.f32 %v1440_v3, %v1013_v63  ;;  %v1113_v13 = vmax.f32 %v1095_v7, 0.0 }
 0x380   : > { %v1104_v8 = vpop.f32.mrf.mxu1 }
 0x381   : > { %v1116_v10 = vmax.f32 %v1110_v4, 0.0  ;;  %v1105_v11 = vadd.f32 %v1104_v8, %v1008_v1 }
 0x383   : > { %v1115_v45 = vmax.f32 %v1105_v11, 0.0  ;;  %1441 = vmatprep.subr.mxu0 %v1116_v10 }
 0x384   : > { %1442 = vmatpush3.msra.mxu0 %v1116_v10 }
 0x385   : > { %1443 = vmatprep.subr.mxu0 %v1115_v45 }
 0x386   : > { %1444 = vmatpush3.msra.mxu0 %v1115_v45 }
 0x387   : > { %1445 = vmatprep.subr.mxu0 %v1114_v5 }
 0x388   : > { %1446 = vmatpush3.msra.mxu0 %v1114_v5 }
 0x389   : > { %1447 = vmatprep.subr.mxu0 %v1113_v13 }
 0x38a   : > { %1448 = vmatpush3.msra.mxu0 %v1113_v13 }
 0x38b   : > { %1450 = vmatmul.mubr.msk.f32.vlgmr.msra.gmra.mxu0 %vm1015_vm6, %v1118_v14 }
 0x44b   : > { %v1451_v16 = vpop.f32.mrf.mxu0 }
 0x44c   : > { %v1209_v17 = vadd.f32 %v1451_v16, %v1129_v15 }
 0x44d   : > { %v1203_v19 = vpop.f32.mrf.mxu0 }
 0x44e   : > { %1213 = vst.msk [vmem:[%s448_s13 + $0x8] sm:$0xff] %vm534_vm1, %v1209_v17  ;;  %v1204_v20 = vadd.f32 %v1203_v19, %v1124_v18 }
 0x450   : > { %1212 = vst.msk [vmem:[%s448_s13] sm:$0xff] %vm534_vm1, %v1204_v20 }
 0x451   : > { %1547 = shalt.err (!%p1544_p5)
}
 0x452   : > { %s1548_s26 = scalar_lea.hbm %s1905_s12, 256  ;;  %s1552_s15 = scalar_lea.hbm %s1964_s11, 512 }
 0x453   : > { %p1549_p6 = scmp.ne.s32.totalorder %s1905_s12, %s1548_s26  ;;  %p1553_p10 = scmp.lt.s32.totalorder %s1905_s12, %s1964_s11 }
 0x454   : > { %p1554_p11 = scmp.lt.s32.totalorder %s1552_s15, %s1548_s26 }
 0x455   : > { %p1550_p7 = pnand %p1549_p6, %p1720_p4 }
 0x456   : > { %p1555_p12 = por %p1554_p11, %p1553_p10 }
 0x457   : > { %p1551_p9 = pneg %p1550_p7 }
 0x459   : > { %p1556_p13 = pnand %p1555_p12, %p1551_p9 }
 0x45b   : > { %1559 = shalt.err (!%p1556_p13)
}
 0x45c   : > { %s1618_s1 = smov 128   ;;  %s1619_s20 = smov 8  }
 0x45d   : > { %1452 = dma.vmem_to_hbm [thread:$0]  (%p1720_p4), %s1899_s14, 256, %s1905_s12, %s1908_s23, %s1618_s1, %s1618_s1, %s1619_s20  }
 0x45e PF: > { %p1458_p0 = scmp.ge.s32.totalorder %s1610_s22, 2  ;;  %s1244_s28 = sand.u32 1, %s1590_s17  }
 0x45f   : > { %s1245_s26 = scalar_lea.sflag [#allocation3], %s1244_s28 }
 0x460   : > { %p1455_p1 = pnand %p1458_p0, %p1727_p8 }
 0x462   : > { %p1456_p2 = pneg %p1455_p1 }
 0x464   : > { %1585 = dma.done.wait (%p1456_p2), %s1245_s26, 256  }
 0x465   : > { %1587 = vsyncadd (%p1456_p2), %s1245_s26, 4294967040  ;;  %s24_s22 = sadd.s32 1, %s1610_s22   ;;  %s1971_s17 = smov %s1594_s18 }
 0x466   : > { %p21_p3 = scmp.ge.s32.totalorder %s24_s22, 4   ;;  %s1972_s18 = smov %s1598_s19 }
 0x467   : > { %s1973_s19 = smov %s1733_s30  ;;  %s1974_s20 = smov %s1606_s21 }
 0x468   : > { %s1975_s21 = smov %s1977_s25  ;;  %23 = sbr.rel (!%p21_p3) target bundleno = 7 (0x7), region = 108 }
 0x46d   :  { %1250 = vsyncpa [#allocation3], 1 }
 0x46e   :  { %1252 = vsyncpa [#allocation3 + $0x1], 1 }

</bundles_post_ra>
